<compile_context>
chip_gen: v5e
topology: v5e:2x2
jax: 0.10.0
libtpu: 0.0.40
codegen_flags: <defaults>
</compile_context>

<pallas_src>
import math

import jax
import jax.numpy as jnp
from jax.experimental import pallas as pl
from jax.experimental.pallas import tpu as pltpu


# ----------------------------------------------------------------------------
# small helpers
# ----------------------------------------------------------------------------
_LANE = 512          # lane-dense flatten width (multiple of 128)
_NEG_BIG = -1e30     # class-padding value (representable in f32 and bf16)


def _round_up(x, m):
    return ((x + m - 1) // m) * m


def _device_kind():
    try:
        return jax.devices()[0].device_kind.lower()
    except Exception:
        return ""


def _is_v7x():
    k = _device_kind()
    return ("v7" in k) or ("7x" in k)


def _has_bf16_eup():
    # bf16 transcendentals exist on v6e and newer; keep f32 exp on older chips.
    k = _device_kind()
    return not any(t in k for t in ("v2", "v3", "v4", "v5"))


def _vmem_limit_bytes():
    # v7x: 64 MiB physical VMEM -> keep the scoped limit at 32 MiB.
    # v5e/v6e: 128 MiB physical -> 64 MiB scoped enables the larger tiles.
    return (32 if _is_v7x() else 64) * 1024 * 1024


# ----------------------------------------------------------------------------
# Kernel 1: default path -- nn.CrossEntropyLoss (class-index targets, mean)
# ----------------------------------------------------------------------------
def _make_ce_kernel(n_valid, tile_n, tile_c, n_c_tiles, exp_dtype):
    def kernel(tgt_ref, logits_ref, out_ref, m_ref, l_ref, picked_ref):
        i = pl.program_id(0)          # batch tile ("parallel")
        j = pl.program_id(1)          # class tile ("arbitrary" reduction)

        @pl.when(j == 0)
        def _():
            m_ref[...] = jnp.full_like(m_ref, -jnp.inf)
            l_ref[...] = jnp.zeros_like(l_ref)
            picked_ref[...] = jnp.zeros_like(picked_ref)

        block = logits_ref[...].astype(jnp.float32)           # (tile_n, tile_c)

        # --- online (flash-style) logsumexp over class tiles -----------------
        m_old = m_ref[...]
        m_new = jnp.maximum(m_old, jnp.max(block, axis=-1, keepdims=True))
        # EUP-bound exp; run it in bf16 on v6e/v7x when logits are bf16,
        # accumulate in f32.
        p = jnp.exp((block - m_new).astype(exp_dtype)).astype(jnp.float32)
        l_ref[...] = (l_ref[...] * jnp.exp(m_old - m_new)
                      + jnp.sum(p, axis=-1, keepdims=True))
        m_ref[...] = m_new

        # --- pick logits[r, tgt[r]]: fused masked sum, no one-hot, no
        #     per-class-tile transpose (targets arrive as a (tile_n,1) column).
        #     NOTE: targets are assumed to lie in [0, C); ignore_index /
        #     class-probability targets of nn.CrossEntropyLoss are unsupported.
        tgt_col = tgt_ref[...]                                 # (tile_n, 1) i32
        col = (jax.lax.broadcasted_iota(jnp.int32, (tile_n, tile_c), 1)
               + j * tile_c)
        picked_ref[...] += jnp.sum(jnp.where(col == tgt_col, block, 0.0),
                                   axis=-1, keepdims=True)

        # --- finalize: partial NLL sum for this batch tile --------------------
        @pl.when(j == n_c_tiles - 1)
        def _():
            nll = m_ref[...] + jnp.log(l_ref[...]) - picked_ref[...]  # (tile_n,1)
            row_id = (i * tile_n
                      + jax.lax.broadcasted_iota(jnp.int32, (tile_n, 1), 0))
            nll = jnp.where(row_id < n_valid, nll, 0.0)       # mask padded rows
            out_ref[...] = jnp.zeros((1, 8, 128), jnp.float32) + jnp.sum(nll)

    return kernel


def cross_entropy_loss(logits, targets):
    """logits: (N, C) float; targets: (N,) int class indices.  Mean reduction."""
    n, c = logits.shape

    # batch tile: up to 256 rows (multiple of 8); class tile: largest multiple
    # of 128 (<= 2048) dividing the padded class dim, so every logits block is
    # lane-dense.
    tile_n = min(256, _round_up(n, 8))
    n_pad = _round_up(n, tile_n)
    c_pad = _round_up(c, 128)
    tile_c = 128
    for cand in range(min(2048, c_pad), 0, -128):
        if c_pad % cand == 0:
            tile_c = cand
            break
    n_n_tiles = n_pad // tile_n
    n_c_tiles = c_pad // tile_c

    logits_p = logits
    targets_p = targets.astype(jnp.int32)
    if c_pad != c:
        # padded classes: exp(-1e30 - max) == 0 and can never match a target.
        logits_p = jnp.pad(logits_p, ((0, 0), (0, c_pad - c)),
                           constant_values=_NEG_BIG)
    if n_pad != n:
        logits_p = jnp.pad(logits_p, ((0, n_pad - n), (0, 0)))
        targets_p = jnp.pad(targets_p, (0, n_pad - n))
    targets_col = targets_p.reshape(n_pad, 1)                 # (N, 1) column

    exp_dtype = (jnp.bfloat16
                 if (logits.dtype == jnp.bfloat16 and _has_bf16_eup())
                 else jnp.float32)

    kernel = _make_ce_kernel(n, tile_n, tile_c, n_c_tiles, exp_dtype)
    partials = pl.pallas_call(
        kernel,
        out_shape=jax.ShapeDtypeStruct((n_n_tiles, 8, 128), jnp.float32),
        grid_spec=pltpu.PrefetchScalarGridSpec(
            num_scalar_prefetch=0,
            grid=(n_n_tiles, n_c_tiles),
            in_specs=[
                pl.BlockSpec((tile_n, 1), lambda i, j: (i, 0)),
                pl.BlockSpec((tile_n, tile_c), lambda i, j: (i, j)),
            ],
            out_specs=pl.BlockSpec((1, 8, 128), lambda i, j: (i, 0, 0)),
            scratch_shapes=[
                pltpu.VMEM((tile_n, 1), jnp.float32),   # running max
                pltpu.VMEM((tile_n, 1), jnp.float32),   # running sum-exp
                pltpu.VMEM((tile_n, 1), jnp.float32),   # picked target logit
            ],
        ),
        compiler_params=pltpu.CompilerParams(
            dimension_semantics=("parallel", "arbitrary"),
            vmem_limit_bytes=_vmem_limit_bytes(),
        ),
    )(targets_col, logits_p)

    return jnp.sum(partials[:, 0, 0]) / jnp.float32(n)


# ----------------------------------------------------------------------------
# Kernel 2: punisher path -- getloss('normalized_softm'), single streaming pass
# ----------------------------------------------------------------------------
def _make_punisher_kernel(tiles_per_shard, lane):
    def kernel(mk_ref, g_ref, out_ref, sg, smk, smkg, sgg, mn, mx):
        t = pl.program_id(1)          # streaming tile ("arbitrary")

        @pl.when(t == 0)
        def _():
            sg[...] = jnp.zeros_like(sg)
            smk[...] = jnp.zeros_like(smk)
            smkg[...] = jnp.zeros_like(smkg)
            sgg[...] = jnp.zeros_like(sgg)
            mn[...] = jnp.full_like(mn, jnp.inf)
            mx[...] = jnp.full_like(mx, -jnp.inf)

        # Blocks arrive pre-shaped as (sub, 8, lane); folding over axis 0 is a
        # pure cross-vreg VALU add/min/max (no XLU, no full-tile accumulator
        # RMW per input vreg) into vreg-row-sized (8, lane) accumulators.
        g = g_ref[...].astype(jnp.float32)
        mk = mk_ref[...].astype(jnp.float32)

        sg[...] += jnp.sum(g, axis=0)
        smk[...] += jnp.sum(mk, axis=0)
        smkg[...] += jnp.sum(mk * g, axis=0)
        sgg[...] += jnp.sum(g * g, axis=0)
        mn[...] = jnp.minimum(mn[...], jnp.min(g, axis=0))
        mx[...] = jnp.maximum(mx[...], jnp.max(g, axis=0))

        # finalize once per shard: single cross-lane/sublane reduce
        @pl.when(t == tiles_per_shard - 1)
        def _():
            s_g = jnp.sum(sg[...])
            s_mk = jnp.sum(smk[...])
            s_mkg = jnp.sum(smkg[...])
            s_gg = jnp.sum(sgg[...])
            g_min = jnp.min(mn[...])
            g_max = jnp.max(mx[...])
            lane_id = jax.lax.broadcasted_iota(jnp.int32, (1, 8, 128), 2)
            stats = (jnp.where(lane_id == 0, s_g, 0.0)
                     + jnp.where(lane_id == 1, s_mk, 0.0)
                     + jnp.where(lane_id == 2, s_mkg, 0.0)
                     + jnp.where(lane_id == 3, s_gg, 0.0)
                     + jnp.where(lane_id == 4, g_min, 0.0)
                     + jnp.where(lane_id == 5, g_max, 0.0))
            out_ref[...] = stats

    return kernel


def punisher_loss(marked_pixels, gradients, stream_dtype=None):
    """marked_pixels, gradients: NCHW tensors of identical shape.

    stream_dtype=jnp.bfloat16 halves the HBM stream; accumulation stays f32.
    """
    assert marked_pixels.shape == gradients.shape
    total = math.prod(gradients.shape)
    lane = _LANE

    if stream_dtype is not None:
        gradients = gradients.astype(stream_dtype)
        marked_pixels = marked_pixels.astype(stream_dtype)

    g_flat = gradients.reshape(-1)
    mk_flat = marked_pixels.reshape(-1)

    # shard across TensorCores only where there are two of them (v7x)
    nshard = 2 if _is_v7x() else 1
    rows = -(-total // lane)
    # 2 MiB f32 streaming blocks on v5e/v6e; 1 MiB on v7x (half the VMEM)
    pref_rows = 512 if _is_v7x() else 1024
    tile_rows = min(pref_rows, _round_up(-(-rows // nshard), 8))
    rows_pad = _round_up(rows, nshard * tile_rows)
    tiles_per_shard = rows_pad // (nshard * tile_rows)
    padded_total = rows_pad * lane
    n_pad_elems = padded_total - total

    # Pad gradients with a *real* element (g[0]) so streamed min/max are exact
    # without any in-kernel masking; pad marked pixels with 0.  The padded
    # contribution to sum(g)/sum(g*g) is removed analytically below.
    g0 = g_flat[0]
    if n_pad_elems:
        g_flat = jnp.concatenate(
            [g_flat, jnp.full((n_pad_elems,), g0, g_flat.dtype)])
        mk_flat = jnp.concatenate(
            [mk_flat, jnp.zeros((n_pad_elems,), mk_flat.dtype)])

    # lane-dense (rows/8, 8, lane) layout: the in-kernel axis-0 fold then maps
    # 1:1 onto cross-vreg adds (the wrapper reshape is free, row-major).
    sub = tile_rows // 8
    g3d = g_flat.reshape(rows_pad // 8, 8, lane)
    mk3d = mk_flat.reshape(rows_pad // 8, 8, lane)

    kernel = _make_punisher_kernel(tiles_per_shard, lane)
    in_map = lambda s, t: (s * tiles_per_shard + t, 0, 0)
    partials = pl.pallas_call(
        kernel,
        out_shape=jax.ShapeDtypeStruct((nshard, 8, 128), jnp.float32),
        grid_spec=pltpu.PrefetchScalarGridSpec(
            num_scalar_prefetch=0,
            grid=(nshard, tiles_per_shard),
            in_specs=[
                pl.BlockSpec((sub, 8, lane), in_map),
                pl.BlockSpec((sub, 8, lane), in_map),
            ],
            out_specs=pl.BlockSpec((1, 8, 128), lambda s, t: (s, 0, 0)),
            scratch_shapes=[pltpu.VMEM((8, lane), jnp.float32)] * 6,
        ),
        compiler_params=pltpu.CompilerParams(
            dimension_semantics=("parallel", "arbitrary"),
            vmem_limit_bytes=_vmem_limit_bytes(),
        ),
    )(mk3d, g3d)

    # combine per-shard partials
    stats = partials[:, 0, :]                       # (nshard, 128)
    s_g = jnp.sum(stats[:, 0])
    s_mk = jnp.sum(stats[:, 1])
    s_mkg = jnp.sum(stats[:, 2])
    s_gg = jnp.sum(stats[:, 3])
    g_min = jnp.min(stats[:, 4])
    g_max = jnp.max(stats[:, 5])

    # remove the padded elements' contribution to the sums (mk pads are zero)
    g0f = g0.astype(jnp.float32)
    pad_f = jnp.float32(n_pad_elems)
    s_g = s_g - pad_f * g0f
    s_gg = s_gg - pad_f * g0f * g0f

    # single-pass identities for the normalized-softmax loss
    count = jnp.float32(total)
    denom = g_max - g_min + 1e-8
    custom = (s_mkg - g_min * s_mk) / ((s_g - count * g_min) + 1e-8 * denom)
    l2_reg = s_gg / count
    return custom + l2_reg


# ----------------------------------------------------------------------------
# Forward wrapper mirroring PunisherLoss.forward
# ----------------------------------------------------------------------------
def punisher_forward(inputs, targets, epoch, number, decide_callback,
                     marked_pixels=None, gradients=None):
    if decide_callback(epoch, number):
        # TODO(synk): interactive saliency marking / optimizer retrain loop has
        # no Pallas equivalent; we compute the core getloss('normalized_softm').
        return punisher_loss(marked_pixels, gradients)
    else:
        return cross_entropy_loss(inputs, targets)


if __name__ == "__main__":
    key = jax.random.PRNGKey(0)
    k1, k2, k3, k4 = jax.random.split(key, 4)

    # default-loss path inputs: logits (N, C), integer class targets (N,)
    N, C = 8, 32
    logits = jax.random.normal(k1, (N, C), dtype=jnp.float32)
    targets = jax.random.randint(k2, (N,), 0, C, dtype=jnp.int32)

    # punisher path inputs: image-shaped marked pixels / saliency gradients
    img_shape = (2, 4, 16, 16)
    gradients = jnp.abs(jax.random.normal(k3, img_shape, dtype=jnp.float32))
    marked = jax.random.randint(k4, img_shape, -1, 2).astype(jnp.float32)

    # path 2 (decide_callback True): punisher custom loss
    loss_custom = punisher_forward(
        None, None, epoch=0, number=0,
        decide_callback=lambda e, n: True,
        marked_pixels=marked, gradients=gradients)
    loss_custom = jax.block_until_ready(loss_custom)

    # path 1 (decide_callback False): default CrossEntropyLoss
    loss_default = punisher_forward(
        logits, targets, epoch=1, number=0,
        decide_callback=lambda e, n: False)
    loss_default = jax.block_until_ready(loss_default)

    # sanity check against plain-JAX f32 references
    logp_ref = jax.nn.log_softmax(logits, axis=-1)
    ce_ref = -jnp.mean(logp_ref[jnp.arange(N), targets])
    gn = (gradients - gradients.min()) / (gradients.max() - gradients.min() + 1e-8)
    pun_ref = jnp.sum(marked * gn) / (jnp.sum(gn) + 1e-8) + jnp.mean(gradients ** 2)

    assert jnp.allclose(loss_default, ce_ref, atol=1e-5, rtol=1e-4), (loss_default, ce_ref)
    assert jnp.allclose(loss_custom, pun_ref, atol=1e-5, rtol=1e-4), (loss_custom, pun_ref)

    # bf16-streaming punisher path (halves HBM traffic); compared against a
    # reference built from the same bf16-rounded inputs (accumulation is f32).
    loss_custom_bf16 = jax.block_until_ready(
        punisher_loss(marked, gradients, stream_dtype=jnp.bfloat16))
    g_b = gradients.astype(jnp.bfloat16).astype(jnp.float32)
    mk_b = marked.astype(jnp.bfloat16).astype(jnp.float32)
    gn_b = (g_b - g_b.min()) / (g_b.max() - g_b.min() + 1e-8)
    pun_ref_b = jnp.sum(mk_b * gn_b) / (jnp.sum(gn_b) + 1e-8) + jnp.mean(g_b ** 2)
    assert jnp.allclose(loss_custom_bf16, pun_ref_b, atol=1e-3, rtol=1e-3), (
        loss_custom_bf16, pun_ref_b)

    # bf16-logits CE (exercises the bf16 EUP exp path on v6e/v7x)
    logits_b = logits.astype(jnp.bfloat16)
    loss_default_bf16 = jax.block_until_ready(cross_entropy_loss(logits_b, targets))
    logp_ref_b = jax.nn.log_softmax(logits_b.astype(jnp.float32), axis=-1)
    ce_ref_b = -jnp.mean(logp_ref_b[jnp.arange(N), targets])
    assert jnp.allclose(loss_default_bf16, ce_ref_b, atol=3e-2, rtol=3e-2), (
        loss_default_bf16, ce_ref_b)

    print("KERNEL_OK")
</pallas_src>

<mosaic_0001>
module attributes {stable_mosaic.version = 11 : i64} {
  func.func @kernel(%arg0: i32, %arg1: i32, %arg2: memref<1x8x512xf32, #tpu.memory_space<vmem>>, %arg3: memref<1x8x512xf32, #tpu.memory_space<vmem>>, %arg4: memref<1x8x128xf32, #tpu.memory_space<vmem>>, %arg5: memref<8x512xf32, #tpu.memory_space<vmem>>, %arg6: memref<8x512xf32, #tpu.memory_space<vmem>>, %arg7: memref<8x512xf32, #tpu.memory_space<vmem>>, %arg8: memref<8x512xf32, #tpu.memory_space<vmem>>, %arg9: memref<8x512xf32, #tpu.memory_space<vmem>>, %arg10: memref<8x512xf32, #tpu.memory_space<vmem>>) attributes {dimension_semantics = [#tpu.dimension_semantics<parallel>, #tpu.dimension_semantics<arbitrary>], iteration_bounds = array<i64: 1, 1>, scalar_prefetch = 0 : i64, scratch_operands = 6 : i64, tpu.core_type = #tpu.core_type<tc>, window_params = [{transform_indices = @transform_0, window_bounds = array<i64: 1, 8, 512>}, {transform_indices = @transform_1, window_bounds = array<i64: 1, 8, 512>}, {transform_indices = @transform_2, window_bounds = array<i64: 1, 8, 128>}]} {
    %c0_i32 = arith.constant 0 : i32
    %0 = arith.cmpi eq, %arg1, %c0_i32 : i32
    %1 = arith.extui %0 : i1 to i32
    %c0_i32_0 = arith.constant 0 : i32
    %2 = arith.cmpi ne, %1, %c0_i32_0 : i32
    scf.if %2 {
      %cst_37 = arith.constant 0.000000e+00 : f32
      %34 = vector.broadcast %cst_37 : f32 to vector<8x512xf32>
      %c0_38 = arith.constant 0 : index
      %c0_39 = arith.constant 0 : index
      %35 = vector.load %arg5[%c0_38, %c0_39] : memref<8x512xf32, #tpu.memory_space<vmem>>, vector<8x512xf32>
      tpu.vector_store %arg5[%c0_38, %c0_39], %34 {strides = array<i32>} : memref<8x512xf32, #tpu.memory_space<vmem>>, vector<8x512xf32>,
      %cst_40 = arith.constant 0.000000e+00 : f32
      %36 = vector.broadcast %cst_40 : f32 to vector<8x512xf32>
      %c0_41 = arith.constant 0 : index
      %c0_42 = arith.constant 0 : index
      %37 = vector.load %arg6[%c0_41, %c0_42] : memref<8x512xf32, #tpu.memory_space<vmem>>, vector<8x512xf32>
      tpu.vector_store %arg6[%c0_41, %c0_42], %36 {strides = array<i32>} : memref<8x512xf32, #tpu.memory_space<vmem>>, vector<8x512xf32>,
      %cst_43 = arith.constant 0.000000e+00 : f32
      %38 = vector.broadcast %cst_43 : f32 to vector<8x512xf32>
      %c0_44 = arith.constant 0 : index
      %c0_45 = arith.constant 0 : index
      %39 = vector.load %arg7[%c0_44, %c0_45] : memref<8x512xf32, #tpu.memory_space<vmem>>, vector<8x512xf32>
      tpu.vector_store %arg7[%c0_44, %c0_45], %38 {strides = array<i32>} : memref<8x512xf32, #tpu.memory_space<vmem>>, vector<8x512xf32>,
      %cst_46 = arith.constant 0.000000e+00 : f32
      %40 = vector.broadcast %cst_46 : f32 to vector<8x512xf32>
      %c0_47 = arith.constant 0 : index
      %c0_48 = arith.constant 0 : index
      %41 = vector.load %arg8[%c0_47, %c0_48] : memref<8x512xf32, #tpu.memory_space<vmem>>, vector<8x512xf32>
      tpu.vector_store %arg8[%c0_47, %c0_48], %40 {strides = array<i32>} : memref<8x512xf32, #tpu.memory_space<vmem>>, vector<8x512xf32>,
      %cst_49 = arith.constant 0x7F800000 : f32
      %42 = vector.broadcast %cst_49 : f32 to vector<8x512xf32>
      %c0_50 = arith.constant 0 : index
      %c0_51 = arith.constant 0 : index
      %43 = vector.load %arg9[%c0_50, %c0_51] : memref<8x512xf32, #tpu.memory_space<vmem>>, vector<8x512xf32>
      tpu.vector_store %arg9[%c0_50, %c0_51], %42 {strides = array<i32>} : memref<8x512xf32, #tpu.memory_space<vmem>>, vector<8x512xf32>,
      %cst_52 = arith.constant 0xFF800000 : f32
      %44 = vector.broadcast %cst_52 : f32 to vector<8x512xf32>
      %c0_53 = arith.constant 0 : index
      %c0_54 = arith.constant 0 : index
      %45 = vector.load %arg10[%c0_53, %c0_54] : memref<8x512xf32, #tpu.memory_space<vmem>>, vector<8x512xf32>
      tpu.vector_store %arg10[%c0_53, %c0_54], %44 {strides = array<i32>} : memref<8x512xf32, #tpu.memory_space<vmem>>, vector<8x512xf32>,
    } else {
    }
    %c0 = arith.constant 0 : index
    %c0_1 = arith.constant 0 : index
    %c0_2 = arith.constant 0 : index
    %3 = vector.load %arg3[%c0, %c0_1, %c0_2] : memref<1x8x512xf32, #tpu.memory_space<vmem>>, vector<1x8x512xf32>
    %c0_3 = arith.constant 0 : index
    %c0_4 = arith.constant 0 : index
    %c0_5 = arith.constant 0 : index
    %4 = vector.load %arg2[%c0_3, %c0_4, %c0_5] : memref<1x8x512xf32, #tpu.memory_space<vmem>>, vector<1x8x512xf32>
    %c0_6 = arith.constant 0 : index
    %c0_7 = arith.constant 0 : index
    %5 = vector.load %arg5[%c0_6, %c0_7] : memref<8x512xf32, #tpu.memory_space<vmem>>, vector<8x512xf32>
    %cst = arith.constant dense<0.000000e+00> : vector<8x512xf32>
    %6 = vector.multi_reduction <add>, %3, %cst [0] : vector<1x8x512xf32> to vector<8x512xf32>
    %7 = arith.addf %5, %6 : vector<8x512xf32>
    %c0_8 = arith.constant 0 : index
    %c0_9 = arith.constant 0 : index
    %8 = vector.load %arg5[%c0_8, %c0_9] : memref<8x512xf32, #tpu.memory_space<vmem>>, vector<8x512xf32>
    tpu.vector_store %arg5[%c0_8, %c0_9], %7 {strides = array<i32>} : memref<8x512xf32, #tpu.memory_space<vmem>>, vector<8x512xf32>,
    %c0_10 = arith.constant 0 : index
    %c0_11 = arith.constant 0 : index
    %9 = vector.load %arg6[%c0_10, %c0_11] : memref<8x512xf32, #tpu.memory_space<vmem>>, vector<8x512xf32>
    %cst_12 = arith.constant dense<0.000000e+00> : vector<8x512xf32>
    %10 = vector.multi_reduction <add>, %4, %cst_12 [0] : vector<1x8x512xf32> to vector<8x512xf32>
    %11 = arith.addf %9, %10 : vector<8x512xf32>
    %c0_13 = arith.constant 0 : index
    %c0_14 = arith.constant 0 : index
    %12 = vector.load %arg6[%c0_13, %c0_14] : memref<8x512xf32, #tpu.memory_space<vmem>>, vector<8x512xf32>
    tpu.vector_store %arg6[%c0_13, %c0_14], %11 {strides = array<i32>} : memref<8x512xf32, #tpu.memory_space<vmem>>, vector<8x512xf32>,
    %c0_15 = arith.constant 0 : index
    %c0_16 = arith.constant 0 : index
    %13 = vector.load %arg7[%c0_15, %c0_16] : memref<8x512xf32, #tpu.memory_space<vmem>>, vector<8x512xf32>
    %14 = arith.mulf %4, %3 : vector<1x8x512xf32>
    %cst_17 = arith.constant dense<0.000000e+00> : vector<8x512xf32>
    %15 = vector.multi_reduction <add>, %14, %cst_17 [0] : vector<1x8x512xf32> to vector<8x512xf32>
    %16 = arith.addf %13, %15 : vector<8x512xf32>
    %c0_18 = arith.constant 0 : index
    %c0_19 = arith.constant 0 : index
    %17 = vector.load %arg7[%c0_18, %c0_19] : memref<8x512xf32, #tpu.memory_space<vmem>>, vector<8x512xf32>
    tpu.vector_store %arg7[%c0_18, %c0_19], %16 {strides = array<i32>} : memref<8x512xf32, #tpu.memory_space<vmem>>, vector<8x512xf32>,
    %c0_20 = arith.constant 0 : index
    %c0_21 = arith.constant 0 : index
    %18 = vector.load %arg8[%c0_20, %c0_21] : memref<8x512xf32, #tpu.memory_space<vmem>>, vector<8x512xf32>
    %19 = arith.mulf %3, %3 : vector<1x8x512xf32>
    %cst_22 = arith.constant dense<0.000000e+00> : vector<8x512xf32>
    %20 = vector.multi_reduction <add>, %19, %cst_22 [0] : vector<1x8x512xf32> to vector<8x512xf32>
    %21 = arith.addf %18, %20 : vector<8x512xf32>
    %c0_23 = arith.constant 0 : index
    %c0_24 = arith.constant 0 : index
    %22 = vector.load %arg8[%c0_23, %c0_24] : memref<8x512xf32, #tpu.memory_space<vmem>>, vector<8x512xf32>
    tpu.vector_store %arg8[%c0_23, %c0_24], %21 {strides = array<i32>} : memref<8x512xf32, #tpu.memory_space<vmem>>, vector<8x512xf32>,
    %c0_25 = arith.constant 0 : index
    %c0_26 = arith.constant 0 : index
    %23 = vector.load %arg9[%c0_25, %c0_26] : memref<8x512xf32, #tpu.memory_space<vmem>>, vector<8x512xf32>
    %cst_27 = arith.constant dense<0x7F800000> : vector<8x512xf32>
    %24 = vector.multi_reduction <minimumf>, %3, %cst_27 [0] : vector<1x8x512xf32> to vector<8x512xf32>
    %25 = arith.minimumf %23, %24 : vector<8x512xf32>
    %c0_28 = arith.constant 0 : index
    %c0_29 = arith.constant 0 : index
    %26 = vector.load %arg9[%c0_28, %c0_29] : memref<8x512xf32, #tpu.memory_space<vmem>>, vector<8x512xf32>
    tpu.vector_store %arg9[%c0_28, %c0_29], %25 {strides = array<i32>} : memref<8x512xf32, #tpu.memory_space<vmem>>, vector<8x512xf32>,
    %c0_30 = arith.constant 0 : index
    %c0_31 = arith.constant 0 : index
    %27 = vector.load %arg10[%c0_30, %c0_31] : memref<8x512xf32, #tpu.memory_space<vmem>>, vector<8x512xf32>
    %cst_32 = arith.constant dense<0xFF800000> : vector<8x512xf32>
    %28 = vector.multi_reduction <maximumf>, %3, %cst_32 [0] : vector<1x8x512xf32> to vector<8x512xf32>
    %29 = arith.maximumf %27, %28 : vector<8x512xf32>
    %c0_33 = arith.constant 0 : index
    %c0_34 = arith.constant 0 : index
    %30 = vector.load %arg10[%c0_33, %c0_34] : memref<8x512xf32, #tpu.memory_space<vmem>>, vector<8x512xf32>
    tpu.vector_store %arg10[%c0_33, %c0_34], %29 {strides = array<i32>} : memref<8x512xf32, #tpu.memory_space<vmem>>, vector<8x512xf32>,
    %c0_i32_35 = arith.constant 0 : i32
    %31 = arith.cmpi eq, %arg1, %c0_i32_35 : i32
    %32 = arith.extui %31 : i1 to i32
    %c0_i32_36 = arith.constant 0 : i32
    %33 = arith.cmpi ne, %32, %c0_i32_36 : i32
    scf.if %33 {
      %c0_37 = arith.constant 0 : index
      %c0_38 = arith.constant 0 : index
      %34 = vector.load %arg5[%c0_37, %c0_38] : memref<8x512xf32, #tpu.memory_space<vmem>>, vector<8x512xf32>
      %35 = vector.shape_cast %34 : vector<8x512xf32> to vector<1x8x512xf32>
      %cst_39 = arith.constant dense<0.000000e+00> : vector<1xf32>
      %36 = vector.multi_reduction <add>, %35, %cst_39 [1, 2] : vector<1x8x512xf32> to vector<1xf32>
      %37 = vector.shape_cast %36 : vector<1xf32> to vector<1x1x1xf32>
      %38 = vector.extract %37[0, 0, 0] : f32 from vector<1x1x1xf32>
      %c0_40 = arith.constant 0 : index
      %c0_41 = arith.constant 0 : index
      %39 = vector.load %arg6[%c0_40, %c0_41] : memref<8x512xf32, #tpu.memory_space<vmem>>, vector<8x512xf32>
      %40 = vector.shape_cast %39 : vector<8x512xf32> to vector<1x8x512xf32>
      %cst_42 = arith.constant dense<0.000000e+00> : vector<1xf32>
      %41 = vector.multi_reduction <add>, %40, %cst_42 [1, 2] : vector<1x8x512xf32> to vector<1xf32>
      %42 = vector.shape_cast %41 : vector<1xf32> to vector<1x1x1xf32>
      %43 = vector.extract %42[0, 0, 0] : f32 from vector<1x1x1xf32>
      %c0_43 = arith.constant 0 : index
      %c0_44 = arith.constant 0 : index
      %44 = vector.load %arg7[%c0_43, %c0_44] : memref<8x512xf32, #tpu.memory_space<vmem>>, vector<8x512xf32>
      %45 = vector.shape_cast %44 : vector<8x512xf32> to vector<1x8x512xf32>
      %cst_45 = arith.constant dense<0.000000e+00> : vector<1xf32>
      %46 = vector.multi_reduction <add>, %45, %cst_45 [1, 2] : vector<1x8x512xf32> to vector<1xf32>
      %47 = vector.shape_cast %46 : vector<1xf32> to vector<1x1x1xf32>
      %48 = vector.extract %47[0, 0, 0] : f32 from vector<1x1x1xf32>
      %c0_46 = arith.constant 0 : index
      %c0_47 = arith.constant 0 : index
      %49 = vector.load %arg8[%c0_46, %c0_47] : memref<8x512xf32, #tpu.memory_space<vmem>>, vector<8x512xf32>
      %50 = vector.shape_cast %49 : vector<8x512xf32> to vector<1x8x512xf32>
      %cst_48 = arith.constant dense<0.000000e+00> : vector<1xf32>
      %51 = vector.multi_reduction <add>, %50, %cst_48 [1, 2] : vector<1x8x512xf32> to vector<1xf32>
      %52 = vector.shape_cast %51 : vector<1xf32> to vector<1x1x1xf32>
      %53 = vector.extract %52[0, 0, 0] : f32 from vector<1x1x1xf32>
      %c0_49 = arith.constant 0 : index
      %c0_50 = arith.constant 0 : index
      %54 = vector.load %arg9[%c0_49, %c0_50] : memref<8x512xf32, #tpu.memory_space<vmem>>, vector<8x512xf32>
      %55 = vector.shape_cast %54 : vector<8x512xf32> to vector<1x8x512xf32>
      %cst_51 = arith.constant dense<0x7F800000> : vector<1xf32>
      %56 = vector.multi_reduction <minimumf>, %55, %cst_51 [1, 2] : vector<1x8x512xf32> to vector<1xf32>
      %57 = vector.shape_cast %56 : vector<1xf32> to vector<1x1x1xf32>
      %58 = vector.extract %57[0, 0, 0] : f32 from vector<1x1x1xf32>
      %c0_52 = arith.constant 0 : index
      %c0_53 = arith.constant 0 : index
      %59 = vector.load %arg10[%c0_52, %c0_53] : memref<8x512xf32, #tpu.memory_space<vmem>>, vector<8x512xf32>
      %60 = vector.shape_cast %59 : vector<8x512xf32> to vector<1x8x512xf32>
      %cst_54 = arith.constant dense<0xFF800000> : vector<1xf32>
      %61 = vector.multi_reduction <maximumf>, %60, %cst_54 [1, 2] : vector<1x8x512xf32> to vector<1xf32>
      %62 = vector.shape_cast %61 : vector<1xf32> to vector<1x1x1xf32>
      %63 = vector.extract %62[0, 0, 0] : f32 from vector<1x1x1xf32>
      %64 = tpu.iota {dimensions = array<i32: 2>} : vector<1x8x128xi32>
      %c0_i32_55 = arith.constant 0 : i32
      %65 = vector.broadcast %c0_i32_55 : i32 to vector<1x8x128xi32>
      %66 = arith.cmpi eq, %64, %65 : vector<1x8x128xi32>
      %cst_56 = arith.constant 0.000000e+00 : f32
      %67 = vector.broadcast %38 : f32 to vector<1x8x128xf32>
      %68 = vector.broadcast %cst_56 : f32 to vector<1x8x128xf32>
      %69 = arith.select %66, %67, %68 : vector<1x8x128xi1>, vector<1x8x128xf32>
      %c1_i32 = arith.constant 1 : i32
      %70 = vector.broadcast %c1_i32 : i32 to vector<1x8x128xi32>
      %71 = arith.cmpi eq, %64, %70 : vector<1x8x128xi32>
      %cst_57 = arith.constant 0.000000e+00 : f32
      %72 = vector.broadcast %43 : f32 to vector<1x8x128xf32>
      %73 = vector.broadcast %cst_57 : f32 to vector<1x8x128xf32>
      %74 = arith.select %71, %72, %73 : vector<1x8x128xi1>, vector<1x8x128xf32>
      %75 = arith.addf %69, %74 : vector<1x8x128xf32>
      %c2_i32 = arith.constant 2 : i32
      %76 = vector.broadcast %c2_i32 : i32 to vector<1x8x128xi32>
      %77 = arith.cmpi eq, %64, %76 : vector<1x8x128xi32>
      %cst_58 = arith.constant 0.000000e+00 : f32
      %78 = vector.broadcast %48 : f32 to vector<1x8x128xf32>
      %79 = vector.broadcast %cst_58 : f32 to vector<1x8x128xf32>
      %80 = arith.select %77, %78, %79 : vector<1x8x128xi1>, vector<1x8x128xf32>
      %81 = arith.addf %75, %80 : vector<1x8x128xf32>
      %c3_i32 = arith.constant 3 : i32
      %82 = vector.broadcast %c3_i32 : i32 to vector<1x8x128xi32>
      %83 = arith.cmpi eq, %64, %82 : vector<1x8x128xi32>
      %cst_59 = arith.constant 0.000000e+00 : f32
      %84 = vector.broadcast %53 : f32 to vector<1x8x128xf32>
      %85 = vector.broadcast %cst_59 : f32 to vector<1x8x128xf32>
      %86 = arith.select %83, %84, %85 : vector<1x8x128xi1>, vector<1x8x128xf32>
      %87 = arith.addf %81, %86 : vector<1x8x128xf32>
      %c4_i32 = arith.constant 4 : i32
      %88 = vector.broadcast %c4_i32 : i32 to vector<1x8x128xi32>
      %89 = arith.cmpi eq, %64, %88 : vector<1x8x128xi32>
      %cst_60 = arith.constant 0.000000e+00 : f32
      %90 = vector.broadcast %58 : f32 to vector<1x8x128xf32>
      %91 = vector.broadcast %cst_60 : f32 to vector<1x8x128xf32>
      %92 = arith.select %89, %90, %91 : vector<1x8x128xi1>, vector<1x8x128xf32>
      %93 = arith.addf %87, %92 : vector<1x8x128xf32>
      %c5_i32 = arith.constant 5 : i32
      %94 = vector.broadcast %c5_i32 : i32 to vector<1x8x128xi32>
      %95 = arith.cmpi eq, %64, %94 : vector<1x8x128xi32>
      %cst_61 = arith.constant 0.000000e+00 : f32
      %96 = vector.broadcast %63 : f32 to vector<1x8x128xf32>
      %97 = vector.broadcast %cst_61 : f32 to vector<1x8x128xf32>
      %98 = arith.select %95, %96, %97 : vector<1x8x128xi1>, vector<1x8x128xf32>
      %99 = arith.addf %93, %98 : vector<1x8x128xf32>
      %c0_62 = arith.constant 0 : index
      %c0_63 = arith.constant 0 : index
      %c0_64 = arith.constant 0 : index
      %100 = vector.load %arg4[%c0_62, %c0_63, %c0_64] : memref<1x8x128xf32, #tpu.memory_space<vmem>>, vector<1x8x128xf32>
      tpu.vector_store %arg4[%c0_62, %c0_63, %c0_64], %99 {strides = array<i32>} : memref<1x8x128xf32, #tpu.memory_space<vmem>>, vector<1x8x128xf32>,
    } else {
    }
    return
  }
  func.func @transform_0(%arg0: i32, %arg1: i32) -> (i32, i32, i32) {
    %c1_i32 = arith.constant 1 : i32
    %0 = arith.muli %arg0, %c1_i32 : i32
    %1 = arith.addi %0, %arg1 : i32
    %c0_i32 = arith.constant 0 : i32
    %c0_i32_0 = arith.constant 0 : i32
    %c0_i32_1 = arith.constant 0 : i32
    return %1, %c0_i32, %c0_i32_0 : i32, i32, i32
  }
  func.func @transform_1(%arg0: i32, %arg1: i32) -> (i32, i32, i32) {
    %c1_i32 = arith.constant 1 : i32
    %0 = arith.muli %arg0, %c1_i32 : i32
    %1 = arith.addi %0, %arg1 : i32
    %c0_i32 = arith.constant 0 : i32
    %c0_i32_0 = arith.constant 0 : i32
    %c0_i32_1 = arith.constant 0 : i32
    return %1, %c0_i32, %c0_i32_0 : i32, i32, i32
  }
  func.func @transform_2(%arg0: i32, %arg1: i32) -> (i32, i32, i32) {
    %c0_i32 = arith.constant 0 : i32
    %c0_i32_0 = arith.constant 0 : i32
    %c0_i32_1 = arith.constant 0 : i32
    return %arg0, %c0_i32, %c0_i32_0 : i32, i32, i32
  }
}

</mosaic_0001>

<bundles_post_ra>
// kernel: tpu_custom_call.1
= control target key start
LH: loop header
LB: loop body
LE: loop exit
PB: predicated region body
PF: predicated region fallthrough
CT: control target
= control target key end

     0   :  { %7 = vsyncpa [#allocation9], 0  ;;  %s445_s0 = inlined_call_operand.hbm [shape: f32[1,8,512], index: 0, kind: input, shape index: {}]   ;;  %s446_s1 = inlined_call_operand.hbm [shape: f32[1,8,512], index: 1, kind: input, shape index: {}]   ;;  %s447_s2 = inlined_call_operand.hbm [shape: f32[1,8,128], index: 2, kind: output, shape index: {}]  }
   0x1   :  { %8 = vsyncpa [#allocation12], 0 }
   0x2   :  { %9 = vsyncpa [#allocation10], 0  ;;  %s19_s11 = sshll.u32 %s445_s0, 4  ;;  %s418_s12 = smov [#allocation8]   ;;  %s20_s11 = int_to_ptr.hbm [resolvable:$true] %s19_s11 }
   0x3   :  { %s21_s13 = sshll.u32 %s418_s12, 4  ;;  %s34_s16 = sshll.u32 %s446_s1, 4  ;;  %s22_s13 = int_to_ptr.vmem [resolvable:$true] %s21_s13  ;;  %s35_s16 = int_to_ptr.hbm [resolvable:$true] %s34_s16 }
   0x4   :  { %24 = dma.hbm_to_vmem [thread:$0]  %s20_s11, 512, %s22_s13, [#allocation9]  }
   0x5   :  { %s419_s17 = smov [#allocation11]  }
   0x6   :  { %s36_s18 = sshll.u32 %s419_s17, 4  ;;  %s37_s18 = int_to_ptr.vmem [resolvable:$true] %s36_s18 }
   0x7   :  { %39 = dma.hbm_to_vmem [thread:$0]  %s35_s16, 512, %s37_s18, [#allocation12]  }
   0x8   :  { %412 = dma.done.wait [#allocation9], 512  }
   0x9   :  { %413 = vsyncadd [#allocation9], 4294966784 }
   0xa   :  { %414 = dma.done.wait [#allocation12], 512  }
   0xb   :  { %415 = vsyncadd [#allocation12], 4294966784  ;;  %v78_v0 = vld [vmem:[#allocation11] sm:$0xff]  ;;  %v79_v1 = vld [vmem:[#allocation11 + $0x8] sm:$0xff]  ;;  %s420_s23 = smov [#allocation13]   ;;  %s314_s27 = sshll.u32 %s447_s2, 4  ;;  %s315_s27 = int_to_ptr.hbm [resolvable:$true] %s314_s27 }
   0xc   :  { %v80_v2 = vld [vmem:[#allocation11 + $0x10] sm:$0xff]  ;;  %v81_v3 = vld [vmem:[#allocation11 + $0x18] sm:$0xff]  ;;  %v189_v4 = vadd.f32 %v79_v1, %v78_v0  ;;  %v253_v5 = vmin.f32 %v78_v0, %v79_v1  ;;  %v82_v6 = vld [vmem:[#allocation8] sm:$0xff]  ;;  %v142_v13 = vmul.f32 %v78_v0, %v78_v0  ;;  %v143_v20 = vmul.f32 %v79_v1, %v79_v1  ;;  %s312_s24 = sshll.u32 %s420_s23, 4  ;;  %s313_s24 = int_to_ptr.vmem [resolvable:$true] %s312_s24 }
   0xd   :  { %v83_v7 = vld [vmem:[#allocation8 + $0x8] sm:$0xff]  ;;  %v254_v8 = vmin.f32 %v80_v2, %v81_v3  ;;  %v84_v9 = vld [vmem:[#allocation8 + $0x10] sm:$0xff]  ;;  %v85_v10 = vld [vmem:[#allocation8 + $0x18] sm:$0xff]  ;;  %v122_v11 = vmul.f32 %v82_v6, %v78_v0  ;;  %v269_v22 = vmax.f32 %v78_v0, %v79_v1  ;;  %v270_v24 = vmax.f32 %v80_v2, %v81_v3 }
   0xe   :  { %v123_v12 = vmul.f32 %v83_v7, %v79_v1  ;;  %v190_v14 = vadd.f32 %v189_v4, %v80_v2  ;;  %v124_v15 = vmul.f32 %v84_v9, %v80_v2  ;;  %v205_v16 = vadd.f32 %v83_v7, %v82_v6 }
   0xf   :  { %v255_v17 = vmin.f32 %v253_v5, %v254_v8  ;;  %v125_v18 = vmul.f32 %v85_v10, %v81_v3  ;;  %v144_v25 = vmul.f32 %v80_v2, %v80_v2  ;;  %v237_v26 = vadd.f32 %v143_v20, %v142_v13 }
  0x10   :  { %v221_v19 = vadd.f32 %v123_v12, %v122_v11  ;;  %v191_v21 = vadd.f32 %v190_v14, %v81_v3  ;;  %v206_v27 = vadd.f32 %v205_v16, %v84_v9  ;;  %v271_v29 = vmax.f32 %v269_v22, %v270_v24 }
  0x11   :  { %256 = vmin.xlane.f32.xlu2 %v255_v17  ;;  %v145_v30 = vmul.f32 %v81_v3, %v81_v3  ;;  %v238_v31 = vadd.f32 %v237_v26, %v144_v25  ;;  %v281_v12 = vlaneseq }
  0x12   :  { %v222_v23 = vadd.f32 %v221_v19, %v124_v15  ;;  %192 = vadd.xlane.f32.xlu0 %v191_v21  ;;  %v207_v32 = vadd.f32 %v206_v27, %v85_v10 }
  0x13   :  { %v239_v33 = vadd.f32 %v238_v31, %v145_v30  ;;  %v282_v13 = vand.u32 127, %v281_v12 }
  0x14   :  { %v223_v28 = vadd.f32 %v222_v23, %v125_v18 }
  0x15   :  { %vm283_vm0 = vcmp.eq.s32.totalorder %v282_v13, 0  ;;  %vm286_vm1 = vcmp.eq.s32.totalorder %v282_v13, 1  ;;  %vm290_vm2 = vcmp.eq.s32.totalorder %v282_v13, 2  ;;  %vm294_vm3 = vcmp.eq.s32.totalorder %v282_v13, 3 }
  0x16   :  { %224 = vadd.xlane.f32.xlu1 %v223_v28  ;;  %vm298_vm4 = vcmp.eq.s32.totalorder %v282_v13, 4  ;;  %vm302_vm5 = vcmp.eq.s32.totalorder %v282_v13, 5 }
  0x19   :  { %272 = vmax.xlane.f32.xlu2 %v271_v29 }
  0x1a   :  { %208 = vadd.xlane.f32.xlu0 %v207_v32 }
  0x1e   :  { %240 = vadd.xlane.f32.xlu1 %v239_v33 }
  0x84   :  { %v257_v34 = vpop.xlane.xlu2 %256 }
  0x85   :  { %v193_v35 = vpop.xlane.xlu0 %192  ;;  %v258_v38 = vrot.slane %v257_v34, 4 }
  0x86   :  { %v194_v36 = vrot.slane %v193_v35, 4 }
  0x87   :  { %v259_v43 = vmin.f32 %v257_v34, %v258_v38 }
  0x88   :  { %v195_v37 = vadd.f32 %v194_v36, %v193_v35 }
  0x89   :  { %v225_v39 = vpop.xlane.xlu1 %224  ;;  %v260_v52 = vrot.slane %v259_v43, 2 }
  0x8a   :  { %v226_v40 = vrot.slane %v225_v39, 4  ;;  %v196_v41 = vrot.slane %v195_v37, 2 }
  0x8b   :  { %v261_v63 = vmin.f32 %v259_v43, %v260_v52 }
  0x8c   :  { %v227_v42 = vadd.f32 %v226_v40, %v225_v39  ;;  %v273_v44 = vpop.xlane.xlu2 %272  ;;  %v197_v45 = vadd.f32 %v196_v41, %v195_v37 }
  0x8d   :  { %v209_v47 = vpop.xlane.xlu0 %208  ;;  %v274_v48 = vrot.slane %v273_v44, 4  ;;  %v262_v6 = vrot.slane %v261_v63, 1 }
  0x8e   :  { %v228_v46 = vrot.slane %v227_v42, 2  ;;  %v210_v49 = vrot.slane %v209_v47, 4  ;;  %v198_v50 = vrot.slane %v197_v45, 1 }
  0x8f   :  { %v275_v51 = vmax.f32 %v273_v44, %v274_v48  ;;  %v263_v11 = vmin.f32 %v261_v63, %v262_v6 }
  0x90   :  { %v211_v53 = vadd.f32 %v210_v49, %v209_v47  ;;  %v199_v55 = vadd.f32 %v198_v50, %v197_v45  ;;  %v229_v58 = vadd.f32 %v228_v46, %v227_v42 }
  0x91   :  { %v241_v54 = vpop.xlane.xlu1 %240  ;;  %v276_v56 = vrot.slane %v275_v51, 2 }
  0x92   :  { %v242_v57 = vrot.slane %v241_v54, 4  ;;  %v212_v59 = vrot.slane %v211_v53, 2  ;;  %325 = vpush %v199_v55  ;;  %v230_v1 = vrot.slane %v229_v58, 1 }
  0x93   :  { %v277_v60 = vmax.f32 %v275_v51, %v276_v56 }
  0x94   :  { %v243_v61 = vadd.f32 %v242_v57, %v241_v54  ;;  %v213_v62 = vadd.f32 %v212_v59, %v211_v53  ;;  %v231_v7 = vadd.f32 %v230_v1, %v229_v58 }
  0x95   :  { %v278_v4 = vrot.slane %v277_v60, 1 }
  0x96   :  { %v244_v0 = vrot.slane %v243_v61, 2  ;;  %v214_v2 = vrot.slane %v213_v62, 1 }
  0x97   :  { %v279_v10 = vmax.f32 %v277_v60, %v278_v4 }
  0x98   :  { %v245_v3 = vadd.f32 %v244_v0, %v243_v61  ;;  %v215_v5 = vadd.f32 %v214_v2, %v213_v62 }
  0x9a   :  { %v246_v8 = vrot.slane %v245_v3, 1  ;;  %327 = vpush %v215_v5 }
  0x9b   :  { %329 = vpush %v231_v7 }
  0x9c   :  { %v247_v9 = vadd.f32 %v246_v8, %v245_v3 }
  0x9e   :  { %331 = vpush %v247_v9 }
  0x9f   :  { %333 = vpush %v263_v11 }
  0xa0   :  { %335 = vpush %v279_v10 }
  0xc3   :  { %s326_s0 = spop %325 }
  0xc4   :  { %v284_v14 = vstv %s326_s0 }
  0xc5   :  { %v285_v16 = vsel %vm283_vm0, %v284_v14, 0.0 }
  0xcb   :  { %s328_s1 = spop %327 }
  0xcc   :  { %v287_v15 = vstv %s328_s1  ;;  %s330_s19 = spop %329 }
  0xcd   :  { %v288_v17 = vsel %vm286_vm1, %v287_v15, 0.0  ;;  %v291_v18 = vstv %s330_s19 }
  0xce   :  { %v289_v19 = vadd.f32 %v288_v17, %v285_v16  ;;  %v292_v20 = vsel %vm290_vm2, %v291_v18, 0.0 }
  0xcf   :  { %s332_s20 = spop %331 }
  0xd0   :  { %v295_v21 = vstv %s332_s20  ;;  %s334_s21 = spop %333  ;;  %v293_v22 = vadd.f32 %v292_v20, %v289_v19 }
  0xd1   :  { %v299_v23 = vstv %s334_s21  ;;  %s336_s22 = spop %335  ;;  %v296_v24 = vsel %vm294_vm3, %v295_v21, 0.0 }
  0xd2   :  { %v297_v25 = vadd.f32 %v296_v24, %v293_v22  ;;  %v303_v26 = vstv %s336_s22  ;;  %v300_v27 = vsel %vm298_vm4, %v299_v23, 0.0 }
  0xd3   :  { %v304_v29 = vsel %vm302_vm5, %v303_v26, 0.0 }
  0xd4   :  { %v301_v28 = vadd.f32 %v300_v27, %v297_v25 }
  0xd6   :  { %v305_v30 = vadd.f32 %v304_v29, %v301_v28 }
  0xd8   :  { %306 = vst [vmem:[#allocation13] sm:$0xff] %v305_v30 }
  0xd9   :  { %317 = dma.vmem_to_hbm [thread:$0]  %s313_s24, 128, %s315_s27, [#allocation10]  }
  0xda   :  { %416 = dma.done.wait [#allocation10], 128  }
  0xdb   :  { %417 = vsyncadd [#allocation10], 4294967168 }
  0xdc   :  { %322 = vsyncpa [#allocation9], 1 }
  0xdd   :  { %323 = vsyncpa [#allocation12], 1 }
  0xde   :  { %324 = vsyncpa [#allocation10], 1 }

</bundles_post_ra>
